<compile_context>
chip_gen: v6e
topology: v6e:2x2x1
jax: 0.10.0
libtpu: 0.0.40
codegen_flags: <defaults>
</compile_context>

<pallas_src>
import math
import jax
import jax.numpy as jnp
from jax.experimental import pallas as pl
from jax.experimental.pallas import tpu as pltpu


# ----------------------------------------------------------------------------
# Fused per-stage Pallas kernel (channels-on-sublane, points-on-lane)
# ----------------------------------------------------------------------------

def _stage_kernel(xin_ref, w_in_ref, b_in_ref, wblk_ref, bblk_ref,
                  w_out_ref, b_out_ref, logits_ref, m_ref, xmat_ref):
    # xin_ref:   [1, Cin, N]   per-point input, channels on sublanes
    # w_in_ref:  [C, Cin]      conv-in weight
    # b_in_ref:  [C, 1]
    # wblk_ref:  [depth, C, C] residual-block conv weights
    # bblk_ref:  [depth, C, 1]
    # w_out_ref: [C, 1]        conv-out (Cout=1) weight, as a column
    # b_out_ref: [1, 1]
    # logits_ref:[1, 1, N]     output logits (lane-dense along N)
    # m_ref:     [1, 16, 16]   output 9x9 normal matrix, zero-padded to 16x16
    # xmat_ref:  [16, N]       VMEM scratch for the design matrix X
    x_in = xin_ref[0]                                             # [Cin, N]

    # ---- conv-in (1x1 conv == per-point linear) ----
    h = jnp.dot(w_in_ref[...], x_in,
                preferred_element_type=jnp.float32) + b_in_ref[...]   # [C, N]

    # ---- residual context-norm blocks ----
    depth = wblk_ref.shape[0]
    for d in range(depth):                       # static unroll (depth small)
        mean = jnp.mean(h, axis=1, keepdims=True)                 # [C, 1]
        var = jnp.mean((h - mean) ** 2, axis=1, keepdims=True)    # [C, 1]
        hn = (h - mean) * jax.lax.rsqrt(var + 1e-5)
        hr = jnp.maximum(hn, 0.0)
        h = h + jnp.dot(wblk_ref[d], hr,
                        preferred_element_type=jnp.float32) + bblk_ref[d]

    # ---- conv-out (Cout=1): VPU multiply + channel (sublane) reduce ----
    logits = jnp.sum(w_out_ref[...] * h, axis=0, keepdims=True) + b_out_ref[...]
    logits_ref[0] = logits                                        # [1, N]

    # ---- weighted 8-point normal matrix: M = X^T diag(relu(tanh(l))) X ----
    w = jnp.maximum(jnp.tanh(logits), 0.0)                        # [1, N]
    x1 = x_in[0:1, :]
    y1 = x_in[1:2, :]
    x2 = x_in[2:3, :]
    y2 = x_in[3:4, :]
    xmat_ref[...] = jnp.zeros_like(xmat_ref)
    xmat_ref[0:1, :] = x2 * x1
    xmat_ref[1:2, :] = x2 * y1
    xmat_ref[2:3, :] = x2
    xmat_ref[3:4, :] = y2 * x1
    xmat_ref[4:5, :] = y2 * y1
    xmat_ref[5:6, :] = y2
    xmat_ref[6:7, :] = x1
    xmat_ref[7:8, :] = y1
    xmat_ref[8:9, :] = jnp.ones_like(x1)
    X = xmat_ref[...]                                             # [16, N]
    # contract over the point axis N (lane-dense) on the MXU -> [16, 16]
    m_ref[0] = jax.lax.dot_general(
        w * X, X, (((1,), (1,)), ((), ())),
        preferred_element_type=jnp.float32)


def stage_forward(p, x_in_cn):
    """Fused PointCN stage.

    x_in_cn: [B, Cin, N] (channels-on-sublane).  Rows 0..3 are the raw
    correspondences (x1, y1, x2, y2).  Returns (logits [B, N], M [B, 9, 9]).
    """
    B, Cin, N = x_in_cn.shape
    C = p["w_in"].shape[0]
    depth = p["wblk"].shape[0]

    logits1n, m16 = pl.pallas_call(
        _stage_kernel,
        out_shape=(
            jax.ShapeDtypeStruct((B, 1, N), jnp.float32),
            jax.ShapeDtypeStruct((B, 16, 16), jnp.float32),
        ),
        grid_spec=pltpu.PrefetchScalarGridSpec(
            num_scalar_prefetch=0,
            grid=(B,),
            in_specs=[
                pl.BlockSpec((1, Cin, N), lambda b: (b, 0, 0)),
                pl.BlockSpec((C, Cin), lambda b: (0, 0)),
                pl.BlockSpec((C, 1), lambda b: (0, 0)),
                pl.BlockSpec((depth, C, C), lambda b: (0, 0, 0)),
                pl.BlockSpec((depth, C, 1), lambda b: (0, 0, 0)),
                pl.BlockSpec((C, 1), lambda b: (0, 0)),
                pl.BlockSpec((1, 1), lambda b: (0, 0)),
            ],
            out_specs=[
                pl.BlockSpec((1, 1, N), lambda b: (b, 0, 0)),
                pl.BlockSpec((1, 16, 16), lambda b: (b, 0, 0)),
            ],
            scratch_shapes=[pltpu.VMEM((16, N), jnp.float32)],
        ),
        compiler_params=pltpu.CompilerParams(
            dimension_semantics=("parallel",),
        ),
    )(x_in_cn, p["w_in"], p["b_in"], p["wblk"], p["bblk"],
      p["w_out"], p["b_out"])

    logits = logits1n[:, 0, :]     # [B, N]
    M = m16[:, :9, :9]             # padded rows/cols are exact zeros
    return logits, M


# ----------------------------------------------------------------------------
# Architecture (PointCN stack) + weighted_8points glue
# ----------------------------------------------------------------------------

def architecture_forward(stage_params, x_in_cn):
    """Returns (logits [B, N], e_hat [B, 9])."""
    logits, M = stage_forward(stage_params, x_in_cn)
    M = 0.5 * (M + jnp.swapaxes(M, 1, 2))
    # TODO(synk): symmetric eigendecomposition (smallest eigenvector of M) has
    # no Pallas equivalent; done with jnp.linalg.eigh in plain JAX glue.
    _, evecs = jnp.linalg.eigh(M)
    e_hat = evecs[..., 0]                                         # [B, 9]
    e_hat = e_hat / jnp.maximum(
        jnp.linalg.norm(e_hat, axis=1, keepdims=True), 1e-8)
    return logits, e_hat


def can_forward(params, xs, iter_num):
    """xs: [B, 1, N, 4]  ->  (list of logits [B, N], list of e_hat [B, 9])."""
    assert xs.ndim == 4 and xs.shape[1] == 1
    B, _, N, _ = xs.shape
    # one-time tiny transpose to channels-on-sublane layout: [B, 4, N]
    xs_cn = jnp.transpose(xs[:, 0], (0, 2, 1))

    res_logits, res_e_hat = [], []
    logits, e_hat = architecture_forward(params["init"], xs_cn)
    res_logits.append(logits)
    res_e_hat.append(e_hat)

    # weight = relu(tanh(logits)), detached, repeated into 2 channels
    weight = jax.lax.stop_gradient(jnp.maximum(jnp.tanh(logits), 0.0))  # [B, N]
    w2 = jnp.broadcast_to(weight[:, None, :], (B, 2, N))                # [B, 2, N]

    for i in range(iter_num):
        # tiny [B, 6, N] concat (a few KB); everything heavy stays in the kernel
        x_in = jnp.concatenate([xs_cn, w2], axis=1)
        logits, e_hat = architecture_forward(params["iter"][i], x_in)
        res_logits.append(logits)
        res_e_hat.append(e_hat)
    return res_logits, res_e_hat


# ----------------------------------------------------------------------------
# Deterministic parameter init (weights stored in [Cout, Cin] layout)
# ----------------------------------------------------------------------------

def _init_linear(key, cin, cout):
    kw, kb = jax.random.split(key)
    w = jax.random.normal(kw, (cout, cin), jnp.float32) * (1.0 / math.sqrt(cin))
    b = jax.random.normal(kb, (cout, 1), jnp.float32) * 0.01
    return w, b


def init_arch_params(key, channels, in_ch, depth):
    keys = jax.random.split(key, depth + 2)
    w_in, b_in = _init_linear(keys[0], in_ch, channels)
    ws, bs = [], []
    for d in range(depth):
        w, b = _init_linear(keys[1 + d], channels, channels)
        ws.append(w)
        bs.append(b)
    wblk = jnp.stack(ws, axis=0)                   # [depth, C, C]
    bblk = jnp.stack(bs, axis=0)                   # [depth, C, 1]
    w_out, b_out = _init_linear(keys[depth + 1], channels, 1)   # [1, C], [1, 1]
    return {
        "w_in": w_in, "b_in": b_in,
        "wblk": wblk, "bblk": bblk,
        "w_out": jnp.transpose(w_out),             # [C, 1] column for reduce
        "b_out": b_out,                            # [1, 1]
    }


def init_can_params(key, net_channels, net_depth, iter_num):
    depth_each_stage = net_depth // (iter_num + 1)
    keys = jax.random.split(key, iter_num + 1)
    return {
        "init": init_arch_params(keys[0], net_channels, 4, depth_each_stage),
        "iter": [
            init_arch_params(keys[1 + i], net_channels, 6, depth_each_stage)
            for i in range(iter_num)
        ],
    }


# ----------------------------------------------------------------------------
# Main
# ----------------------------------------------------------------------------

if __name__ == "__main__":
    # config: net_channels=32, net_depth=6, iter_num=1 (-> depth_each_stage=3)
    net_channels, net_depth, iter_num = 32, 6, 1

    key = jax.random.PRNGKey(0)
    kx, kp = jax.random.split(key)

    B, N = 2, 128
    xs = jax.random.normal(kx, (B, 1, N, 4), jnp.float32)  # data['xs']

    params = init_can_params(kp, net_channels, net_depth, iter_num)

    res_logits, res_e_hat = can_forward(params, xs, iter_num)
    jax.block_until_ready((res_logits, res_e_hat))

    assert len(res_logits) == iter_num + 1 and len(res_e_hat) == iter_num + 1
    assert all(l.shape == (B, N) for l in res_logits)
    assert all(e.shape == (B, 9) for e in res_e_hat)
    assert all(bool(jnp.all(jnp.isfinite(l))) for l in res_logits)
    assert all(bool(jnp.all(jnp.isfinite(e))) for e in res_e_hat)
    print("KERNEL_OK")
</pallas_src>

<mosaic_0001>
module attributes {stable_mosaic.version = 11 : i64} {
  func.func @_stage_kernel(%arg0: i32, %arg1: memref<1x4x128xf32, #tpu.memory_space<vmem>>, %arg2: memref<32x4xf32, #tpu.memory_space<vmem>>, %arg3: memref<32x1xf32, #tpu.memory_space<vmem>>, %arg4: memref<3x32x32xf32, #tpu.memory_space<vmem>>, %arg5: memref<3x32x1xf32, #tpu.memory_space<vmem>>, %arg6: memref<32x1xf32, #tpu.memory_space<vmem>>, %arg7: memref<1x1xf32, #tpu.memory_space<vmem>>, %arg8: memref<1x1x128xf32, #tpu.memory_space<vmem>>, %arg9: memref<1x16x16xf32, #tpu.memory_space<vmem>>, %arg10: memref<16x128xf32, #tpu.memory_space<vmem>>) attributes {dimension_semantics = [#tpu.dimension_semantics<parallel>], iteration_bounds = array<i64: 2>, scalar_prefetch = 0 : i64, scratch_operands = 1 : i64, tpu.core_type = #tpu.core_type<tc>, window_params = [{transform_indices = @transform_0, window_bounds = array<i64: 1, 4, 128>}, {pipeline_mode = #tpu.pipeline_mode<synchronous>, transform_indices = @transform_1, window_bounds = array<i64: 32, 4>}, {pipeline_mode = #tpu.pipeline_mode<synchronous>, transform_indices = @transform_2, window_bounds = array<i64: 32, 1>}, {pipeline_mode = #tpu.pipeline_mode<synchronous>, transform_indices = @transform_3, window_bounds = array<i64: 3, 32, 32>}, {pipeline_mode = #tpu.pipeline_mode<synchronous>, transform_indices = @transform_4, window_bounds = array<i64: 3, 32, 1>}, {pipeline_mode = #tpu.pipeline_mode<synchronous>, transform_indices = @transform_5, window_bounds = array<i64: 32, 1>}, {pipeline_mode = #tpu.pipeline_mode<synchronous>, transform_indices = @transform_6, window_bounds = array<i64: 1, 1>}, {transform_indices = @transform_7, window_bounds = array<i64: 1, 1, 128>}, {transform_indices = @transform_8, window_bounds = array<i64: 1, 16, 16>}]} {
    %c0 = arith.constant 0 : index
    %c0_0 = arith.constant 0 : index
    %c0_1 = arith.constant 0 : index
    %0 = vector.load %arg1[%c0, %c0_0, %c0_1] : memref<1x4x128xf32, #tpu.memory_space<vmem>>, vector<1x4x128xf32>
    %1 = vector.shape_cast %0 : vector<1x4x128xf32> to vector<4x128xf32>
    %c0_2 = arith.constant 0 : index
    %c0_3 = arith.constant 0 : index
    %2 = vector.load %arg2[%c0_2, %c0_3] : memref<32x4xf32, #tpu.memory_space<vmem>>, vector<32x4xf32>
    %cst = arith.constant dense<0.000000e+00> : vector<32x128xf32>
    %3 = tpu.matmul %2, %1, %cst {dimension_numbers = #tpu.dot_dimension_numbers<[1], [0], [0], [1], [0, 0, 1, 1], [], []>} : vector<32x4xf32>, vector<4x128xf32>, vector<32x128xf32> -> vector<32x128xf32>
    %c0_4 = arith.constant 0 : index
    %c0_5 = arith.constant 0 : index
    %4 = vector.load %arg3[%c0_4, %c0_5] : memref<32x1xf32, #tpu.memory_space<vmem>>, vector<32x1xf32>
    %5 = vector.broadcast %4 : vector<32x1xf32> to vector<32x128xf32>
    %6 = arith.addf %3, %5 : vector<32x128xf32>
    %cst_6 = arith.constant dense<0.000000e+00> : vector<32xf32>
    %7 = vector.multi_reduction <add>, %6, %cst_6 [1] : vector<32x128xf32> to vector<32xf32>
    %8 = vector.shape_cast %7 : vector<32xf32> to vector<32x1xf32>
    %cst_7 = arith.constant 1.280000e+02 : f32
    %9 = vector.broadcast %cst_7 : f32 to vector<32x1xf32>
    %10 = arith.divf %8, %9 : vector<32x1xf32>
    %11 = vector.broadcast %10 : vector<32x1xf32> to vector<32x128xf32>
    %12 = arith.subf %6, %11 : vector<32x128xf32>
    %13 = arith.mulf %12, %12 : vector<32x128xf32>
    %cst_8 = arith.constant dense<0.000000e+00> : vector<32xf32>
    %14 = vector.multi_reduction <add>, %13, %cst_8 [1] : vector<32x128xf32> to vector<32xf32>
    %15 = vector.shape_cast %14 : vector<32xf32> to vector<32x1xf32>
    %cst_9 = arith.constant 1.280000e+02 : f32
    %16 = vector.broadcast %cst_9 : f32 to vector<32x1xf32>
    %17 = arith.divf %15, %16 : vector<32x1xf32>
    %18 = vector.broadcast %10 : vector<32x1xf32> to vector<32x128xf32>
    %19 = arith.subf %6, %18 : vector<32x128xf32>
    %cst_10 = arith.constant 9.99999974E-6 : f32
    %20 = vector.broadcast %cst_10 : f32 to vector<32x1xf32>
    %21 = arith.addf %17, %20 : vector<32x1xf32>
    %22 = math.rsqrt %21 : vector<32x1xf32>
    %23 = vector.broadcast %22 : vector<32x1xf32> to vector<32x128xf32>
    %24 = arith.mulf %19, %23 : vector<32x128xf32>
    %cst_11 = arith.constant 0.000000e+00 : f32
    %25 = vector.broadcast %cst_11 : f32 to vector<32x128xf32>
    %26 = arith.maximumf %24, %25 : vector<32x128xf32>
    %c0_12 = arith.constant 0 : index
    %c0_13 = arith.constant 0 : index
    %c0_14 = arith.constant 0 : index
    %27 = vector.load %arg4[%c0_12, %c0_13, %c0_14] : memref<3x32x32xf32, #tpu.memory_space<vmem>>, vector<1x32x32xf32>
    %28 = vector.shape_cast %27 : vector<1x32x32xf32> to vector<32x32xf32>
    %cst_15 = arith.constant dense<0.000000e+00> : vector<32x128xf32>
    %29 = tpu.matmul %28, %26, %cst_15 {dimension_numbers = #tpu.dot_dimension_numbers<[1], [0], [0], [1], [0, 0, 1, 1], [], []>} : vector<32x32xf32>, vector<32x128xf32>, vector<32x128xf32> -> vector<32x128xf32>
    %30 = arith.addf %6, %29 : vector<32x128xf32>
    %c0_16 = arith.constant 0 : index
    %c0_17 = arith.constant 0 : index
    %c0_18 = arith.constant 0 : index
    %31 = vector.load %arg5[%c0_16, %c0_17, %c0_18] : memref<3x32x1xf32, #tpu.memory_space<vmem>>, vector<1x32x1xf32>
    %32 = vector.shape_cast %31 : vector<1x32x1xf32> to vector<32x1xf32>
    %33 = vector.broadcast %32 : vector<32x1xf32> to vector<32x128xf32>
    %34 = arith.addf %30, %33 : vector<32x128xf32>
    %cst_19 = arith.constant dense<0.000000e+00> : vector<32xf32>
    %35 = vector.multi_reduction <add>, %34, %cst_19 [1] : vector<32x128xf32> to vector<32xf32>
    %36 = vector.shape_cast %35 : vector<32xf32> to vector<32x1xf32>
    %cst_20 = arith.constant 1.280000e+02 : f32
    %37 = vector.broadcast %cst_20 : f32 to vector<32x1xf32>
    %38 = arith.divf %36, %37 : vector<32x1xf32>
    %39 = vector.broadcast %38 : vector<32x1xf32> to vector<32x128xf32>
    %40 = arith.subf %34, %39 : vector<32x128xf32>
    %41 = arith.mulf %40, %40 : vector<32x128xf32>
    %cst_21 = arith.constant dense<0.000000e+00> : vector<32xf32>
    %42 = vector.multi_reduction <add>, %41, %cst_21 [1] : vector<32x128xf32> to vector<32xf32>
    %43 = vector.shape_cast %42 : vector<32xf32> to vector<32x1xf32>
    %cst_22 = arith.constant 1.280000e+02 : f32
    %44 = vector.broadcast %cst_22 : f32 to vector<32x1xf32>
    %45 = arith.divf %43, %44 : vector<32x1xf32>
    %46 = vector.broadcast %38 : vector<32x1xf32> to vector<32x128xf32>
    %47 = arith.subf %34, %46 : vector<32x128xf32>
    %cst_23 = arith.constant 9.99999974E-6 : f32
    %48 = vector.broadcast %cst_23 : f32 to vector<32x1xf32>
    %49 = arith.addf %45, %48 : vector<32x1xf32>
    %50 = math.rsqrt %49 : vector<32x1xf32>
    %51 = vector.broadcast %50 : vector<32x1xf32> to vector<32x128xf32>
    %52 = arith.mulf %47, %51 : vector<32x128xf32>
    %cst_24 = arith.constant 0.000000e+00 : f32
    %53 = vector.broadcast %cst_24 : f32 to vector<32x128xf32>
    %54 = arith.maximumf %52, %53 : vector<32x128xf32>
    %c1 = arith.constant 1 : index
    %c0_25 = arith.constant 0 : index
    %c0_26 = arith.constant 0 : index
    %55 = vector.load %arg4[%c1, %c0_25, %c0_26] : memref<3x32x32xf32, #tpu.memory_space<vmem>>, vector<1x32x32xf32>
    %56 = vector.shape_cast %55 : vector<1x32x32xf32> to vector<32x32xf32>
    %cst_27 = arith.constant dense<0.000000e+00> : vector<32x128xf32>
    %57 = tpu.matmul %56, %54, %cst_27 {dimension_numbers = #tpu.dot_dimension_numbers<[1], [0], [0], [1], [0, 0, 1, 1], [], []>} : vector<32x32xf32>, vector<32x128xf32>, vector<32x128xf32> -> vector<32x128xf32>
    %58 = arith.addf %34, %57 : vector<32x128xf32>
    %c1_28 = arith.constant 1 : index
    %c0_29 = arith.constant 0 : index
    %c0_30 = arith.constant 0 : index
    %59 = vector.load %arg5[%c1_28, %c0_29, %c0_30] : memref<3x32x1xf32, #tpu.memory_space<vmem>>, vector<1x32x1xf32>
    %60 = vector.shape_cast %59 : vector<1x32x1xf32> to vector<32x1xf32>
    %61 = vector.broadcast %60 : vector<32x1xf32> to vector<32x128xf32>
    %62 = arith.addf %58, %61 : vector<32x128xf32>
    %cst_31 = arith.constant dense<0.000000e+00> : vector<32xf32>
    %63 = vector.multi_reduction <add>, %62, %cst_31 [1] : vector<32x128xf32> to vector<32xf32>
    %64 = vector.shape_cast %63 : vector<32xf32> to vector<32x1xf32>
    %cst_32 = arith.constant 1.280000e+02 : f32
    %65 = vector.broadcast %cst_32 : f32 to vector<32x1xf32>
    %66 = arith.divf %64, %65 : vector<32x1xf32>
    %67 = vector.broadcast %66 : vector<32x1xf32> to vector<32x128xf32>
    %68 = arith.subf %62, %67 : vector<32x128xf32>
    %69 = arith.mulf %68, %68 : vector<32x128xf32>
    %cst_33 = arith.constant dense<0.000000e+00> : vector<32xf32>
    %70 = vector.multi_reduction <add>, %69, %cst_33 [1] : vector<32x128xf32> to vector<32xf32>
    %71 = vector.shape_cast %70 : vector<32xf32> to vector<32x1xf32>
    %cst_34 = arith.constant 1.280000e+02 : f32
    %72 = vector.broadcast %cst_34 : f32 to vector<32x1xf32>
    %73 = arith.divf %71, %72 : vector<32x1xf32>
    %74 = vector.broadcast %66 : vector<32x1xf32> to vector<32x128xf32>
    %75 = arith.subf %62, %74 : vector<32x128xf32>
    %cst_35 = arith.constant 9.99999974E-6 : f32
    %76 = vector.broadcast %cst_35 : f32 to vector<32x1xf32>
    %77 = arith.addf %73, %76 : vector<32x1xf32>
    %78 = math.rsqrt %77 : vector<32x1xf32>
    %79 = vector.broadcast %78 : vector<32x1xf32> to vector<32x128xf32>
    %80 = arith.mulf %75, %79 : vector<32x128xf32>
    %cst_36 = arith.constant 0.000000e+00 : f32
    %81 = vector.broadcast %cst_36 : f32 to vector<32x128xf32>
    %82 = arith.maximumf %80, %81 : vector<32x128xf32>
    %c2 = arith.constant 2 : index
    %c0_37 = arith.constant 0 : index
    %c0_38 = arith.constant 0 : index
    %83 = vector.load %arg4[%c2, %c0_37, %c0_38] : memref<3x32x32xf32, #tpu.memory_space<vmem>>, vector<1x32x32xf32>
    %84 = vector.shape_cast %83 : vector<1x32x32xf32> to vector<32x32xf32>
    %cst_39 = arith.constant dense<0.000000e+00> : vector<32x128xf32>
    %85 = tpu.matmul %84, %82, %cst_39 {dimension_numbers = #tpu.dot_dimension_numbers<[1], [0], [0], [1], [0, 0, 1, 1], [], []>} : vector<32x32xf32>, vector<32x128xf32>, vector<32x128xf32> -> vector<32x128xf32>
    %86 = arith.addf %62, %85 : vector<32x128xf32>
    %c2_40 = arith.constant 2 : index
    %c0_41 = arith.constant 0 : index
    %c0_42 = arith.constant 0 : index
    %87 = vector.load %arg5[%c2_40, %c0_41, %c0_42] : memref<3x32x1xf32, #tpu.memory_space<vmem>>, vector<1x32x1xf32>
    %88 = vector.shape_cast %87 : vector<1x32x1xf32> to vector<32x1xf32>
    %89 = vector.broadcast %88 : vector<32x1xf32> to vector<32x128xf32>
    %90 = arith.addf %86, %89 : vector<32x128xf32>
    %c0_43 = arith.constant 0 : index
    %c0_44 = arith.constant 0 : index
    %91 = vector.load %arg6[%c0_43, %c0_44] : memref<32x1xf32, #tpu.memory_space<vmem>>, vector<32x1xf32>
    %92 = vector.broadcast %91 : vector<32x1xf32> to vector<32x128xf32>
    %93 = arith.mulf %92, %90 : vector<32x128xf32>
    %cst_45 = arith.constant dense<0.000000e+00> : vector<128xf32>
    %94 = vector.multi_reduction <add>, %93, %cst_45 [0] : vector<32x128xf32> to vector<128xf32>
    %95 = vector.shape_cast %94 : vector<128xf32> to vector<1x128xf32>
    %c0_46 = arith.constant 0 : index
    %c0_47 = arith.constant 0 : index
    %96 = vector.load %arg7[%c0_46, %c0_47] : memref<1x1xf32, #tpu.memory_space<vmem>>, vector<1x1xf32>
    %97 = vector.broadcast %96 : vector<1x1xf32> to vector<1x128xf32>
    %98 = arith.addf %95, %97 : vector<1x128xf32>
    %c0_48 = arith.constant 0 : index
    %c0_49 = arith.constant 0 : index
    %c0_50 = arith.constant 0 : index
    %99 = vector.load %arg8[%c0_48, %c0_49, %c0_50] : memref<1x1x128xf32, #tpu.memory_space<vmem>>, vector<1x1x128xf32>
    %100 = vector.shape_cast %99 : vector<1x1x128xf32> to vector<1x128xf32>
    %101 = vector.shape_cast %98 : vector<1x128xf32> to vector<1x1x128xf32>
    tpu.vector_store %arg8[%c0_48, %c0_49, %c0_50], %101 {strides = array<i32>} : memref<1x1x128xf32, #tpu.memory_space<vmem>>, vector<1x1x128xf32>,
    %102 = math.tanh %98 : vector<1x128xf32>
    %cst_51 = arith.constant 0.000000e+00 : f32
    %103 = vector.broadcast %cst_51 : f32 to vector<1x128xf32>
    %104 = arith.maximumf %102, %103 : vector<1x128xf32>
    %105 = vector.extract_strided_slice %1 {offsets = [0, 0], sizes = [1, 128], strides = [1, 1]} : vector<4x128xf32> to vector<1x128xf32>
    %106 = vector.extract_strided_slice %1 {offsets = [1, 0], sizes = [1, 128], strides = [1, 1]} : vector<4x128xf32> to vector<1x128xf32>
    %107 = vector.extract_strided_slice %1 {offsets = [2, 0], sizes = [1, 128], strides = [1, 1]} : vector<4x128xf32> to vector<1x128xf32>
    %108 = vector.extract_strided_slice %1 {offsets = [3, 0], sizes = [1, 128], strides = [1, 1]} : vector<4x128xf32> to vector<1x128xf32>
    %cst_52 = arith.constant 0.000000e+00 : f32
    %109 = vector.broadcast %cst_52 : f32 to vector<16x128xf32>
    %c0_53 = arith.constant 0 : index
    %c0_54 = arith.constant 0 : index
    %110 = vector.load %arg10[%c0_53, %c0_54] : memref<16x128xf32, #tpu.memory_space<vmem>>, vector<16x128xf32>
    tpu.vector_store %arg10[%c0_53, %c0_54], %109 {strides = array<i32>} : memref<16x128xf32, #tpu.memory_space<vmem>>, vector<16x128xf32>,
    %111 = arith.mulf %107, %105 : vector<1x128xf32>
    %c0_55 = arith.constant 0 : index
    %c0_56 = arith.constant 0 : index
    %112 = vector.load %arg10[%c0_55, %c0_56] : memref<16x128xf32, #tpu.memory_space<vmem>>, vector<1x128xf32>
    tpu.vector_store %arg10[%c0_55, %c0_56], %111 {strides = array<i32>} : memref<16x128xf32, #tpu.memory_space<vmem>>, vector<1x128xf32>,
    %113 = arith.mulf %107, %106 : vector<1x128xf32>
    %c1_57 = arith.constant 1 : index
    %c0_58 = arith.constant 0 : index
    %114 = vector.load %arg10[%c1_57, %c0_58] : memref<16x128xf32, #tpu.memory_space<vmem>>, vector<1x128xf32>
    tpu.vector_store %arg10[%c1_57, %c0_58], %113 {strides = array<i32>} : memref<16x128xf32, #tpu.memory_space<vmem>>, vector<1x128xf32>,
    %c2_59 = arith.constant 2 : index
    %c0_60 = arith.constant 0 : index
    %115 = vector.load %arg10[%c2_59, %c0_60] : memref<16x128xf32, #tpu.memory_space<vmem>>, vector<1x128xf32>
    tpu.vector_store %arg10[%c2_59, %c0_60], %107 {strides = array<i32>} : memref<16x128xf32, #tpu.memory_space<vmem>>, vector<1x128xf32>,
    %116 = arith.mulf %108, %105 : vector<1x128xf32>
    %c3 = arith.constant 3 : index
    %c0_61 = arith.constant 0 : index
    %117 = vector.load %arg10[%c3, %c0_61] : memref<16x128xf32, #tpu.memory_space<vmem>>, vector<1x128xf32>
    tpu.vector_store %arg10[%c3, %c0_61], %116 {strides = array<i32>} : memref<16x128xf32, #tpu.memory_space<vmem>>, vector<1x128xf32>,
    %118 = arith.mulf %108, %106 : vector<1x128xf32>
    %c4 = arith.constant 4 : index
    %c0_62 = arith.constant 0 : index
    %119 = vector.load %arg10[%c4, %c0_62] : memref<16x128xf32, #tpu.memory_space<vmem>>, vector<1x128xf32>
    tpu.vector_store %arg10[%c4, %c0_62], %118 {strides = array<i32>} : memref<16x128xf32, #tpu.memory_space<vmem>>, vector<1x128xf32>,
    %c5 = arith.constant 5 : index
    %c0_63 = arith.constant 0 : index
    %120 = vector.load %arg10[%c5, %c0_63] : memref<16x128xf32, #tpu.memory_space<vmem>>, vector<1x128xf32>
    tpu.vector_store %arg10[%c5, %c0_63], %108 {strides = array<i32>} : memref<16x128xf32, #tpu.memory_space<vmem>>, vector<1x128xf32>,
    %c6 = arith.constant 6 : index
    %c0_64 = arith.constant 0 : index
    %121 = vector.load %arg10[%c6, %c0_64] : memref<16x128xf32, #tpu.memory_space<vmem>>, vector<1x128xf32>
    tpu.vector_store %arg10[%c6, %c0_64], %105 {strides = array<i32>} : memref<16x128xf32, #tpu.memory_space<vmem>>, vector<1x128xf32>,
    %c7 = arith.constant 7 : index
    %c0_65 = arith.constant 0 : index
    %122 = vector.load %arg10[%c7, %c0_65] : memref<16x128xf32, #tpu.memory_space<vmem>>, vector<1x128xf32>
    tpu.vector_store %arg10[%c7, %c0_65], %106 {strides = array<i32>} : memref<16x128xf32, #tpu.memory_space<vmem>>, vector<1x128xf32>,
    %cst_66 = arith.constant 1.000000e+00 : f32
    %123 = vector.broadcast %cst_66 : f32 to vector<1x128xf32>
    %c8 = arith.constant 8 : index
    %c0_67 = arith.constant 0 : index
    %124 = vector.load %arg10[%c8, %c0_67] : memref<16x128xf32, #tpu.memory_space<vmem>>, vector<1x128xf32>
    tpu.vector_store %arg10[%c8, %c0_67], %123 {strides = array<i32>} : memref<16x128xf32, #tpu.memory_space<vmem>>, vector<1x128xf32>,
    %c0_68 = arith.constant 0 : index
    %c0_69 = arith.constant 0 : index
    %125 = vector.load %arg10[%c0_68, %c0_69] : memref<16x128xf32, #tpu.memory_space<vmem>>, vector<16x128xf32>
    %126 = vector.broadcast %104 : vector<1x128xf32> to vector<16x128xf32>
    %127 = arith.mulf %126, %125 : vector<16x128xf32>
    %cst_70 = arith.constant dense<0.000000e+00> : vector<16x16xf32>
    %128 = tpu.matmul %127, %125, %cst_70 {dimension_numbers = #tpu.dot_dimension_numbers<[1], [1], [0], [0], [0, 0, 1, 0], [], []>} : vector<16x128xf32>, vector<16x128xf32>, vector<16x16xf32> -> vector<16x16xf32>
    %c0_71 = arith.constant 0 : index
    %c0_72 = arith.constant 0 : index
    %c0_73 = arith.constant 0 : index
    %129 = vector.load %arg9[%c0_71, %c0_72, %c0_73] : memref<1x16x16xf32, #tpu.memory_space<vmem>>, vector<1x16x16xf32>
    %130 = vector.shape_cast %129 : vector<1x16x16xf32> to vector<16x16xf32>
    %131 = vector.shape_cast %128 : vector<16x16xf32> to vector<1x16x16xf32>
    tpu.vector_store %arg9[%c0_71, %c0_72, %c0_73], %131 {strides = array<i32>} : memref<1x16x16xf32, #tpu.memory_space<vmem>>, vector<1x16x16xf32>,
    return
  }
  func.func @transform_0(%arg0: i32) -> (i32, i32, i32) {
    %c0_i32 = arith.constant 0 : i32
    %c0_i32_0 = arith.constant 0 : i32
    %c0_i32_1 = arith.constant 0 : i32
    return %arg0, %c0_i32, %c0_i32_0 : i32, i32, i32
  }
  func.func @transform_1(%arg0: i32) -> (i32, i32) {
    %c0_i32 = arith.constant 0 : i32
    %c0_i32_0 = arith.constant 0 : i32
    %c0_i32_1 = arith.constant 0 : i32
    return %c0_i32, %c0_i32_0 : i32, i32
  }
  func.func @transform_2(%arg0: i32) -> (i32, i32) {
    %c0_i32 = arith.constant 0 : i32
    %c0_i32_0 = arith.constant 0 : i32
    %c0_i32_1 = arith.constant 0 : i32
    return %c0_i32, %c0_i32_0 : i32, i32
  }
  func.func @transform_3(%arg0: i32) -> (i32, i32, i32) {
    %c0_i32 = arith.constant 0 : i32
    %c0_i32_0 = arith.constant 0 : i32
    %c0_i32_1 = arith.constant 0 : i32
    %c0_i32_2 = arith.constant 0 : i32
    return %c0_i32, %c0_i32_0, %c0_i32_1 : i32, i32, i32
  }
  func.func @transform_4(%arg0: i32) -> (i32, i32, i32) {
    %c0_i32 = arith.constant 0 : i32
    %c0_i32_0 = arith.constant 0 : i32
    %c0_i32_1 = arith.constant 0 : i32
    %c0_i32_2 = arith.constant 0 : i32
    return %c0_i32, %c0_i32_0, %c0_i32_1 : i32, i32, i32
  }
  func.func @transform_5(%arg0: i32) -> (i32, i32) {
    %c0_i32 = arith.constant 0 : i32
    %c0_i32_0 = arith.constant 0 : i32
    %c0_i32_1 = arith.constant 0 : i32
    return %c0_i32, %c0_i32_0 : i32, i32
  }
  func.func @transform_6(%arg0: i32) -> (i32, i32) {
    %c0_i32 = arith.constant 0 : i32
    %c0_i32_0 = arith.constant 0 : i32
    %c0_i32_1 = arith.constant 0 : i32
    return %c0_i32, %c0_i32_0 : i32, i32
  }
  func.func @transform_7(%arg0: i32) -> (i32, i32, i32) {
    %c0_i32 = arith.constant 0 : i32
    %c0_i32_0 = arith.constant 0 : i32
    %c0_i32_1 = arith.constant 0 : i32
    return %arg0, %c0_i32, %c0_i32_0 : i32, i32, i32
  }
  func.func @transform_8(%arg0: i32) -> (i32, i32, i32) {
    %c0_i32 = arith.constant 0 : i32
    %c0_i32_0 = arith.constant 0 : i32
    %c0_i32_1 = arith.constant 0 : i32
    return %arg0, %c0_i32, %c0_i32_0 : i32, i32, i32
  }
}

</mosaic_0001>

<bundles_post_ra>
// kernel: tpu_custom_call.1
= control target key start
LH: loop header
LB: loop body
LE: loop exit
PB: predicated region body
PF: predicated region fallthrough
CT: control target
= control target key end

     0   :  { %s1948_s0 = inlined_call_operand.vmem [shape: f32[2,4,128], index: 0, kind: input, shape index: {}]   ;;  %s1949_s1 = inlined_call_operand.vmem [shape: f32[32,4], index: 1, kind: input, shape index: {}]   ;;  %s1950_s2 = inlined_call_operand.vmem [shape: f32[32,1], index: 2, kind: input, shape index: {}]   ;;  %s1951_s3 = inlined_call_operand.vmem [shape: f32[3,32,32], index: 3, kind: input, shape index: {}]   ;;  %s1952_s4 = inlined_call_operand.vmem [shape: f32[3,32,1], index: 4, kind: input, shape index: {}]   ;;  %s1953_s5 = inlined_call_operand.vmem [shape: f32[32,1], index: 5, kind: input, shape index: {}]   ;;  %s1954_s6 = inlined_call_operand.<no memory space> [shape: f32[1,1], index: 6, kind: input, shape index: {}]   ;;  %s1955_s7 = inlined_call_operand.hbm [shape: f32[2,1,128], index: 7, kind: output, shape index: {0}]   ;;  %s1956_s8 = inlined_call_operand.hbm [shape: f32[2,16,16], index: 8, kind: output, shape index: {1}]  }
   0x1   :  { %v14_v0 = vstv %s1954_s6 }
   0x2   :  { %15 = vst [vmem:[#allocation3] sm:$0x1] %v14_v0 }
   0x3   :  { %16 = vsyncpa [#allocation5], 0 }
   0x4   :  { %18 = vsyncpa [#allocation5 + $0x1], 0 }
   0x5   :  { %19 = vsyncpa [#allocation7], 0 }
   0x6   :  { %21 = vsyncpa [#allocation7 + $0x1], 0  ;;  %s1627_s29 = smov 0   ;;  %s1629_s30 = smov 0  }
   0x7   :  { %s1631_s9 = smov 0   ;;  %s1633_s10 = smov 0  }
   0x8 LB: > { %s1648_s6 = sadd.s32 4294967295, %s1570_s10   ;;  %s1267_s11 = sadd.s32 4294967294, %s1570_s10   ;;  %s1570_s10 = sphi %s1633_s10, %s1962_s10   ;;  %s1566_s9 = sphi %s1631_s9, %s1961_s9   ;;  %s1562_s30 = sphi %s1629_s30, %s1960_s30   ;;  %s1558_s29 = sphi %s1627_s29, %s1959_s29  }
   0x9   : > { %s1652_s12 = sadd.s32 1, %s1570_s10   ;;  %s186_s13 = sadd.s32 1, %s1566_s9 }
   0xa   : > { %s183_s14 = ssub.s32 %s1570_s10, %s1652_s12  ;;  %p196_p0 = scmp.ne.s32.totalorder %s1566_s9, %s1562_s30 }
   0xb   : > { %p184_p1 = scmp.eq.s32.totalorder %s183_s14, 0  ;;  %p197_p2 = scmp.eq.s32.totalorder %s1648_s6, 1 }
   0xc   : > { %p202_p3 = scmp.ne.s32.totalorder %s1562_s30, %s1558_s29  ;;  %p203_p4 = scmp.eq.s32.totalorder %s1267_s11, 1 }
   0xd   : > { %s1663_s15 = scalar_select %p184_p1, %s1566_s9, %s186_s13  }
   0xe   : > { %p1665_p5 = por %p197_p2, %p196_p0  ;;  %p1669_p6 = por %p203_p4, %p202_p3 }
   0xf   : > { %p1270_p7 = scmp.ge.s32.totalorder %s1570_s10, 1  ;;  %p272_p8 = scmp.lt.s32.totalorder %s1570_s10, 3 }
  0x11   : > { %p273_p9 = pnand %p1270_p7, %p272_p8 }
  0x12   : > { %p309_p10 = scmp.lt.s32.totalorder (!%p273_p9), %s1648_s6, 1  ;;  %s1307_s27 = sshll.u32 (!%p273_p9), %s1648_s6, 4 }
  0x13   : > { %276 = sbr.rel (%p273_p9) target bundleno = 2025 (0x7e9), region = 48  ;;  %s1575_s20 = smov (!%p273_p9), [#allocation4]  }
  0x14   : > { %s1484_s21 = sshll.u32 (!%p273_p9), %s1575_s20, 4  ;;  %s1485_s21 = int_to_ptr.vmem [resolvable:$false] %s1484_s21 }
  0x15   : > { %s1486_s22 = scalar_lea.vmem (!%p273_p9), %s1485_s21, 32 }
  0x18   : > { %v314_v1 = vld [vmem:[%s1949_s1] sm:$0xff]  ;;  %vm342_vm0 = vcmask 31744   ;;  %v319_v2 = vld [vmem:[%s1950_s2 + $0x8] sm:$0xff]  ;;  %v321_v3 = vld [vmem:[%s1950_s2 + $0x18] sm:$0xff]  ;;  %s310_s24 = scalar_select %p309_p10, %s1648_s6, 1  ;;  %v1572_v4 = vmov 0  }
  0x19   : > { %1348 = vmatprep.mubr.msk.f32.mxu0 %vm342_vm0, %v314_v1  ;;  %1453 = vset.pattern.permute.xlu1 %v1572_v4  ;;  %vm355_vm1 = vcmask 1043456   ;;  %v318_v5 = vld [vmem:[%s1950_s2] sm:$0xff]  ;;  %v320_v6 = vld [vmem:[%s1950_s2 + $0x10] sm:$0xff]  ;;  %v315_v8 = vld [vmem:[%s1949_s1 + $0x8] sm:$0xff]  ;;  %vm497_vm2 = vcmask 261120  }
  0x1a   : > { %1452 = vset.pattern.permute.xlu0 %v1572_v4  ;;  %329 = vperm.xlu1 %1453, %v319_v2   ;;  %s1272_s25 = sshll.u32 %s310_s24, 2  ;;  %v316_v9 = vld [vmem:[%s1949_s1 + $0x10] sm:$0xff]  ;;  %v317_v10 = vld [vmem:[%s1949_s1 + $0x18] sm:$0xff]  ;;  %v600_v40 = vld [vmem:[%s1952_s4 + $0x8] sm:$0xff] }
  0x1b   : > { %339 = vperm.xlu0 %1452, %v321_v3   ;;  %s312_s13 = scalar_lea.vmem %s1948_s0, %s1272_s25  ;;  %v602_v39 = vld [vmem:[%s1952_s4 + $0x18] sm:$0xff]  ;;  %v599_v41 = vld [vmem:[%s1952_s4] sm:$0xff]  ;;  %v601_v42 = vld [vmem:[%s1952_s4 + $0x10] sm:$0xff]  ;;  %s1879_s25 = sand.u32 1, %s1562_s30  }
  0x1c   : > { %v1696_v7 = vld [vmem:[%s312_s13] sm:$0xf]  ;;  %v494_v4 = vld [vmem:[%s1951_s3 + $0x8] sm:$0xff]  ;;  %s301_s26 = scalar_lea.vmem [#allocation4], %s1879_s25  ;;  %s1162_s13 = scalar_lea.hbm %s1955_s7, %s1307_s27 }
  0x1d   : > { %1346 = vmatprep.subr.msk.mxu0 %vm355_vm1, %v1696_v7  ;;  %v493_v43 = vld [vmem:[%s1951_s3] sm:$0xff]  ;;  %s1164_s14 = sshll.u32 %s301_s26, 4  ;;  %s1147_s18 = scalar_lea.sflag [#allocation5], %s1879_s25  ;;  %s1165_s14 = int_to_ptr.vmem [resolvable:$true] %s1164_s14 }
  0x1e   : > { %324 = vperm.xlu1 %1453, %v318_v5   ;;  %1347 = vmatpush3.msk.msra.mxu0 %vm355_vm1, %v1696_v7  ;;  %v495_v5 = vld [vmem:[%s1951_s3 + $0x10] sm:$0xff]  ;;  %s1480_s19 = scalar_lea.vmem %s1165_s14, 16  ;;  %p1487_p0 = scmp.lt.s32.totalorder %s1165_s14, %s1485_s21 }
  0x1f   : > { %334 = vperm.xlu0 %1452, %v320_v6   ;;  %1349 = vmatmul.mubr.msk.f32.vlgmr.msra.gmra.mxu0 %vm342_vm0, %v315_v8  ;;  %v496_v6 = vld [vmem:[%s1951_s3 + $0x18] sm:$0xff]  ;;  %p1481_p11 = scmp.ne.s32.totalorder %s1165_s14, %s1480_s19  ;;  %p1488_p1 = scmp.lt.s32.totalorder %s1486_s22, %s1480_s19 }
  0x20   : > { %1351 = vmatprep.mubr.msk.f32.mxu0 %vm342_vm0, %v316_v9  ;;  %1362 = vmatprep.mubr.msk.f32.mxu1 %vm497_vm2, %v493_v43  ;;  %v1292_v43 = vld [vmem:[%s1952_s4 + $0x30] sm:$0xff] }
  0x21   : > { %p1482_p12 = pnand %p1481_p11, %p1665_p5  ;;  %p1489_p2 = por %p1488_p1, %p1487_p0 }
  0x23   : > { %1352 = vmatmul.mubr.msk.f32.gmra.mxu0 %vm342_vm0, %v317_v10  ;;  %p1483_p13 = pneg %p1482_p12 }
  0x25   : > { %p1490_p3 = pnand %p1489_p2, %p1483_p13 }
  0x95   : > { %v330_v14 = vpop.permute.xlu1 %329 }
  0x96   : > { %v340_v11 = vpop.permute.xlu0 %339 }
  0x99   : > { %v325_v21 = vpop.permute.xlu1 %324 }
  0x9a   : > { %v335_v17 = vpop.permute.xlu0 %334 }
  0xdf   : > { %v1350_v12 = vpop.f32.mrf.mxu0 }
  0xe0   : > { %v1717_v20 = vadd.f32 %v1350_v12, %v330_v14 }
  0xe1   : > { %v425_v13 = vpop.f32.mrf.mxu0 }
  0xe2   : > { %v1721_v22 = vadd.f32 %v425_v13, %v325_v21 }
  0xe3   : > { %v1353_v15 = vpop.f32.mrf.mxu0 }
  0xe4   : > { %v1712_v16 = vadd.f32 %v1353_v15, %v340_v11 }
  0xe5   : > { %v435_v18 = vpop.f32.mrf.mxu0 }
  0xe6   : > { %v1714_v19 = vadd.f32 %v435_v18, %v335_v17  ;;  %450 = vadd.xlane.f32.xlu0 %v1712_v16 }
  0xe8   : > { %448 = vadd.xlane.f32.xlu1 %v1714_v19 }
  0xea   : > { %446 = vadd.xlane.f32.xlu0 %v1717_v20 }
  0xee   : > { %444 = vadd.xlane.f32.xlu0 %v1721_v22 }
 0x16f   : > { %v451_v23 = vpop.xlane.xlu0 %450 }
 0x170   : > { %v456_v24 = vmul.f32 0.0078125, %v451_v23 }
 0x171   : > { %v449_v25 = vpop.xlane.xlu1 %448 }
 0x172   : > { %v460_v26 = vsub.f32 %v1712_v16, %v456_v24  ;;  %v455_v27 = vmul.f32 0.0078125, %v449_v25 }
 0x173   : > { %v447_v28 = vpop.xlane.xlu0 %446 }
 0x174   : > { %v459_v29 = vsub.f32 %v1714_v19, %v455_v27  ;;  %v454_v30 = vmul.f32 0.0078125, %v447_v28  ;;  %v464_v31 = vmul.f32 %v460_v26, %v460_v26 }
 0x176   : > { %v458_v32 = vsub.f32 %v1717_v20, %v454_v30  ;;  %471 = vadd.xlane.f32.xlu1 %v464_v31  ;;  %v463_v33 = vmul.f32 %v459_v29, %v459_v29 }
 0x177   : > { %v445_v34 = vpop.xlane.xlu0 %444 }
 0x178   : > { %v453_v35 = vmul.f32 0.0078125, %v445_v34  ;;  %469 = vadd.xlane.f32.xlu0 %v463_v33  ;;  %v462_v36 = vmul.f32 %v458_v32, %v458_v32 }
 0x17a   : > { %v457_v37 = vsub.f32 %v1721_v22, %v453_v35  ;;  %467 = vadd.xlane.f32.xlu1 %v462_v36 }
 0x17c   : > { %v461_v38 = vmul.f32 %v457_v37, %v457_v37 }
 0x17e   : > { %465 = vadd.xlane.f32.xlu0 %v461_v38 }
 0x18b   : > { %620 = vperm.xlu1 %1453, %v602_v39  }
 0x18f   : > { %610 = vperm.xlu1 %1453, %v600_v40   ;;  %v1293_v40 = vld [vmem:[%s1952_s4 + $0x38] sm:$0xff] }
 0x193   : > { %605 = vperm.xlu1 %1453, %v599_v41   ;;  %v1291_v41 = vld [vmem:[%s1952_s4 + $0x28] sm:$0xff] }
 0x194   : > { %615 = vperm.xlu0 %1452, %v601_v42   ;;  %v1290_v42 = vld [vmem:[%s1952_s4 + $0x20] sm:$0xff] }
 0x1ff   : > { %v472_v44 = vpop.xlane.xlu1 %471 }
 0x200   : > { %v476_v45 = vmul.f32 0.0078125, %v472_v44  ;;  %v1282_v44 = vld [vmem:[%s1951_s3 + $0x20] sm:$0xff] }
 0x201   : > { %v470_v46 = vpop.xlane.xlu0 %469  ;;  %1376 = vmatprep.mubr.msk.f32.mxu0 %vm497_vm2, %v1282_v44  ;;  %v1303_v44 = vld [vmem:[%s1952_s4 + $0x48] sm:$0xff] }
 0x202   : > { %v480_v47 = vadd.f32 1e-05, %v476_v45  ;;  %v475_v48 = vmul.f32 0.0078125, %v470_v46 }
 0x203   : > { %v468_v49 = vpop.xlane.xlu1 %467 }
 0x204   : > { %1454 = vrsqrt.f32 %v480_v47  ;;  %v479_v50 = vadd.f32 1e-05, %v475_v48  ;;  %v474_v51 = vmul.f32 0.0078125, %v468_v49 }
 0x206   : > { %1456 = vrsqrt.f32 %v479_v50  ;;  %v478_v52 = vadd.f32 1e-05, %v474_v51 }
 0x207   : > { %v466_v53 = vpop.xlane.xlu0 %465  ;;  %v621_v9 = vpop.permute.xlu1 %620 }
 0x208   : > { %1458 = vrsqrt.f32 %v478_v52  ;;  %v473_v54 = vmul.f32 0.0078125, %v466_v53 }
 0x20a   : > { %v477_v55 = vadd.f32 1e-05, %v473_v54 }
 0x20b   : > { %v611_v18 = vpop.permute.xlu1 %610 }
 0x20c   : > { %1460 = vrsqrt.f32 %v477_v55 }
 0x20f   : > { %v616_v21 = vpop.permute.xlu0 %615 }
 0x211   : > { %v1455_v56 = vpop.eup %1454 }
 0x212   : > { %v488_v57 = vmul.f32 %v1455_v56, %v460_v26 }
 0x213   : > { %v1457_v58 = vpop.eup %1456 }
 0x214   : > { %v492_v59 = vmax.f32 %v488_v57, 0.0  ;;  %v487_v60 = vmul.f32 %v1457_v58, %v459_v29 }
 0x215   : > { %v1459_v61 = vpop.eup %1458 }
 0x216   : > { %1354 = vmatprep.subr.mxu1 %v492_v59  ;;  %v491_v62 = vmax.f32 %v487_v60, 0.0  ;;  %v486_v63 = vmul.f32 %v1459_v61, %v458_v32 }
 0x217   : > { %1355 = vmatpush3.msra.mxu1 %v492_v59 }
 0x218   : > { %1356 = vmatprep.subr.mxu1 %v491_v62  ;;  %v490_v0 = vmax.f32 %v486_v63, 0.0 }
 0x219   : > { %v1461_v1 = vpop.eup %1460  ;;  %1357 = vmatpush3.msra.mxu1 %v491_v62 }
 0x21a   : > { %1358 = vmatprep.subr.mxu1 %v490_v0  ;;  %v485_v2 = vmul.f32 %v1461_v1, %v457_v37 }
 0x21b   : > { %1359 = vmatpush3.msra.mxu1 %v490_v0 }
 0x21c   : > { %v489_v3 = vmax.f32 %v485_v2, 0.0 }
 0x21e   : > { %1360 = vmatprep.subr.mxu1 %v489_v3 }
 0x21f   : > { %1361 = vmatpush3.msra.mxu1 %v489_v3 }
 0x220   : > { %1363 = vmatmul.mubr.msk.f32.vlgmr.msra.gmra.mxu1 %vm497_vm2, %v494_v4 }
 0x221   : > { %1365 = vmatprep.mubr.msk.f32.mxu1 %vm497_vm2, %v495_v5  ;;  %v1283_v5 = vld [vmem:[%s1951_s3 + $0x28] sm:$0xff] }
 0x224   : > { %1366 = vmatmul.mubr.msk.f32.gmra.mxu1 %vm497_vm2, %v496_v6  ;;  %v1284_v6 = vld [vmem:[%s1951_s3 + $0x30] sm:$0xff] }
 0x2e0   : > { %v1364_v8 = vpop.f32.mrf.mxu1 }
 0x2e1   : > { %v596_v14 = vadd.f32 %v1364_v8, %v1717_v20  ;;  %v1285_v8 = vld [vmem:[%s1951_s3 + $0x38] sm:$0xff] }
 0x2e2   : > { %v576_v10 = vpop.f32.mrf.mxu1 }
 0x2e3   : > { %v1764_v24 = vadd.f32 %v611_v18, %v596_v14  ;;  %v595_v25 = vadd.f32 %v576_v10, %v1721_v22 }
 0x2e4   : > { %v1367_v11 = vpop.f32.mrf.mxu1 }
 0x2e5   : > { %v598_v12 = vadd.f32 %v1367_v11, %v1712_v16  ;;  %v606_v16 = vpop.permute.xlu1 %605 }
 0x2e6   : > { %v586_v13 = vpop.f32.mrf.mxu1  ;;  %v1769_v20 = vadd.f32 %v606_v16, %v595_v25 }
 0x2e7   : > { %v1758_v15 = vadd.f32 %v621_v9, %v598_v12  ;;  %v597_v17 = vadd.f32 %v586_v13, %v1714_v19 }
 0x2e9   : > { %v1761_v23 = vadd.f32 %v616_v21, %v597_v17  ;;  %633 = vadd.xlane.f32.xlu0 %v1758_v15 }
 0x2eb   : > { %631 = vadd.xlane.f32.xlu1 %v1761_v23 }
 0x2ed   : > { %629 = vadd.xlane.f32.xlu0 %v1764_v24 }
 0x2f1   : > { %627 = vadd.xlane.f32.xlu0 %v1769_v20 }
 0x372   : > { %v634_v19 = vpop.xlane.xlu0 %633 }
 0x373   : > { %v638_v26 = vmul.f32 0.0078125, %v634_v19 }
 0x374   : > { %v632_v27 = vpop.xlane.xlu1 %631 }
 0x375   : > { %v642_v28 = vsub.f32 %v1758_v15, %v638_v26  ;;  %v637_v29 = vmul.f32 0.0078125, %v632_v27 }
 0x376   : > { %v630_v30 = vpop.xlane.xlu0 %629 }
 0x377   : > { %v641_v31 = vsub.f32 %v1761_v23, %v637_v29  ;;  %v636_v32 = vmul.f32 0.0078125, %v630_v30  ;;  %v646_v22 = vmul.f32 %v642_v28, %v642_v28 }
 0x379   : > { %v640_v33 = vsub.f32 %v1764_v24, %v636_v32  ;;  %653 = vadd.xlane.f32.xlu1 %v646_v22  ;;  %v645_v34 = vmul.f32 %v641_v31, %v641_v31 }
 0x37a   : > { %v628_v35 = vpop.xlane.xlu0 %627 }
 0x37b   : > { %v635_v36 = vmul.f32 0.0078125, %v628_v35  ;;  %651 = vadd.xlane.f32.xlu0 %v645_v34  ;;  %v644_v37 = vmul.f32 %v640_v33, %v640_v33 }
 0x37d   : > { %v639_v38 = vsub.f32 %v1769_v20, %v635_v36  ;;  %649 = vadd.xlane.f32.xlu1 %v644_v37 }
 0x37f   : > { %v643_v39 = vmul.f32 %v639_v38, %v639_v38 }
 0x381   : > { %647 = vadd.xlane.f32.xlu0 %v643_v39 }
 0x38e   : > { %803 = vperm.xlu1 %1453, %v1293_v40  }
 0x392   : > { %793 = vperm.xlu1 %1453, %v1291_v41   ;;  %v1302_v41 = vld [vmem:[%s1952_s4 + $0x40] sm:$0xff] }
 0x396   : > { %788 = vperm.xlu1 %1453, %v1290_v42   ;;  %v1304_v42 = vld [vmem:[%s1952_s4 + $0x50] sm:$0xff] }
 0x397   : > { %798 = vperm.xlu0 %1452, %v1292_v43   ;;  %v993_v43 = vld [vmem:[%s1953_s5] sm:$0xff] }
 0x402   : > { %v654_v45 = vpop.xlane.xlu1 %653 }
 0x403   : > { %v658_v46 = vmul.f32 0.0078125, %v654_v45  ;;  %v1305_v45 = vld [vmem:[%s1952_s4 + $0x58] sm:$0xff] }
 0x404   : > { %v652_v47 = vpop.xlane.xlu0 %651 }
 0x405   : > { %v662_v48 = vadd.f32 1e-05, %v658_v46  ;;  %v657_v49 = vmul.f32 0.0078125, %v652_v47  ;;  %v994_v46 = vld [vmem:[%s1953_s5 + $0x8] sm:$0xff]  ;;  %v996_v47 = vld [vmem:[%s1953_s5 + $0x18] sm:$0xff] }
 0x406   : > { %v650_v50 = vpop.xlane.xlu1 %649 }
 0x407   : > { %1462 = vrsqrt.f32 %v662_v48  ;;  %v661_v51 = vadd.f32 1e-05, %v657_v49  ;;  %v656_v52 = vmul.f32 0.0078125, %v650_v50  ;;  %v995_v48 = vld [vmem:[%s1953_s5 + $0x10] sm:$0xff]  ;;  %v1294_v50 = vld [vmem:[%s1951_s3 + $0x40] sm:$0xff] }
 0x408   : > { %v1030_v49 = vld [vmem:[#allocation3] sm:$0x1]  ;;  %1390 = vmatprep.mubr.msk.f32.mxu1 %vm497_vm2, %v1294_v50 }
 0x409   : > { %1464 = vrsqrt.f32 %v661_v51  ;;  %v660_v53 = vadd.f32 1e-05, %v656_v52 }
 0x40a   : > { %v648_v54 = vpop.xlane.xlu0 %647  ;;  %v804_v10 = vpop.permute.xlu1 %803 }
 0x40b   : > { %1466 = vrsqrt.f32 %v660_v53  ;;  %v655_v55 = vmul.f32 0.0078125, %v648_v54 }
 0x40d   : > { %v659_v56 = vadd.f32 1e-05, %v655_v55 }
 0x40e   : > { %v794_v25 = vpop.permute.xlu1 %793 }
 0x40f   : > { %1468 = vrsqrt.f32 %v659_v56 }
 0x412   : > { %v799_v16 = vpop.permute.xlu0 %798 }
 0x414   : > { %v1463_v57 = vpop.eup %1462 }
 0x415   : > { %v670_v58 = vmul.f32 %v1463_v57, %v642_v28 }
 0x416   : > { %v1465_v59 = vpop.eup %1464 }
 0x417   : > { %v674_v60 = vmax.f32 %v670_v58, 0.0  ;;  %v669_v61 = vmul.f32 %v1465_v59, %v641_v31 }
 0x418   : > { %v1467_v62 = vpop.eup %1466 }
 0x419   : > { %1368 = vmatprep.subr.mxu0 %v674_v60  ;;  %v673_v63 = vmax.f32 %v669_v61, 0.0  ;;  %v668_v0 = vmul.f32 %v1467_v62, %v640_v33 }
 0x41a   : > { %1369 = vmatpush3.msra.mxu0 %v674_v60 }
 0x41b   : > { %1370 = vmatprep.subr.mxu0 %v673_v63  ;;  %v672_v1 = vmax.f32 %v668_v0, 0.0 }
 0x41c   : > { %v1469_v2 = vpop.eup %1468  ;;  %1371 = vmatpush3.msra.mxu0 %v673_v63 }
 0x41d   : > { %1372 = vmatprep.subr.mxu0 %v672_v1  ;;  %v667_v3 = vmul.f32 %v1469_v2, %v639_v38 }
 0x41e   : > { %1373 = vmatpush3.msra.mxu0 %v672_v1 }
 0x41f   : > { %v671_v4 = vmax.f32 %v667_v3, 0.0 }
 0x421   : > { %1374 = vmatprep.subr.mxu0 %v671_v4 }
 0x422   : > { %1375 = vmatpush3.msra.mxu0 %v671_v4 }
 0x423   : > { %1377 = vmatmul.mubr.msk.f32.vlgmr.msra.gmra.mxu0 %vm497_vm2, %v1283_v5 }
 0x424   : > { %1379 = vmatprep.mubr.msk.f32.mxu0 %vm497_vm2, %v1284_v6 }
 0x427   : > { %1380 = vmatmul.mubr.msk.f32.gmra.mxu0 %vm497_vm2, %v1285_v8 }
 0x4e3   : > { %v1378_v9 = vpop.f32.mrf.mxu0 }
 0x4e4   : > { %v778_v17 = vadd.f32 %v1378_v9, %v1764_v24 }
 0x4e5   : > { %v758_v11 = vpop.f32.mrf.mxu0 }
 0x4e6   : > { %v1812_v26 = vadd.f32 %v794_v25, %v778_v17  ;;  %v777_v27 = vadd.f32 %v758_v11, %v1769_v20  ;;  %v1573_v17 = vmov 0.0   ;;  %v1046_v25 = vrot.slane %v1696_v7, 6 }
 0x4e7   : > { %v1381_v12 = vpop.f32.mrf.mxu0  ;;  %1044 = vst [vmem:[#allocation2] sm:$0xff] %v1573_v17  ;;  %1045 = vst [vmem:[#allocation2 + $0x8] sm:$0xff] %v1573_v17 }
 0x4e8   : > { %v780_v13 = vadd.f32 %v1381_v12, %v1758_v15  ;;  %v789_v15 = vpop.permute.xlu1 %788  ;;  %v1295_v12 = vld [vmem:[%s1951_s3 + $0x48] sm:$0xff]  ;;  %1054 = vst [vmem:[#allocation2] sm:$0x4] %v1696_v7  ;;  %1060 = vst [vmem:[#allocation2 + $0x2] sm:$0x8] %v1696_v7 }
 0x4e9   : > { %v768_v14 = vpop.f32.mrf.mxu0  ;;  %v1817_v24 = vadd.f32 %v789_v15, %v777_v27  ;;  %1061 = vst [vmem:[#allocation2 + $0x6] sm:$0x1] %v1696_v7  ;;  %1062 = vst [vmem:[#allocation2 + $0x6] sm:$0x2] %v1696_v7  ;;  %v1055_v27 = vrot.slane %v1696_v7, 5  ;;  %v1048_v15 = vmul.f32 %v1046_v25, %v1696_v7 }
 0x4ea   : > { %v1806_v18 = vadd.f32 %v804_v10, %v780_v13  ;;  %v779_v21 = vadd.f32 %v768_v14, %v1761_v23  ;;  %v1296_v13 = vld [vmem:[%s1951_s3 + $0x50] sm:$0xff]  ;;  %v1297_v14 = vld [vmem:[%s1951_s3 + $0x58] sm:$0xff] }
 0x4eb   : > { %1049 = vst [vmem:[#allocation2 - $0x2] sm:$0x4] %v1048_v15  ;;  %1059 = vst [vmem:[#allocation2 + $0x1] sm:$0x8] %v1048_v15 }
 0x4ec   : > { %v1809_v19 = vadd.f32 %v799_v16, %v779_v21  ;;  %816 = vadd.xlane.f32.xlu0 %v1806_v18  ;;  %v1574_v21 = vmov 1.0   ;;  %v1050_v16 = vrot.slane %v1696_v7, 7 }
 0x4ed   : > { %1063 = vst [vmem:[#allocation2 + $0x8] sm:$0x1] %v1574_v21 }
 0x4ee   : > { %814 = vadd.xlane.f32.xlu1 %v1809_v19 }
 0x4f0   : > { %812 = vadd.xlane.f32.xlu0 %v1812_v26 }
 0x4f4   : > { %810 = vadd.xlane.f32.xlu0 %v1817_v24 }
 0x575   : > { %v817_v23 = vpop.xlane.xlu0 %816 }
 0x576   : > { %v821_v28 = vmul.f32 0.0078125, %v817_v23  ;;  %v1052_v23 = vmul.f32 %v1050_v16, %v1696_v7 }
 0x577   : > { %v815_v29 = vpop.xlane.xlu1 %814 }
 0x578   : > { %v825_v30 = vsub.f32 %v1806_v18, %v821_v28  ;;  %v820_v31 = vmul.f32 0.0078125, %v815_v29  ;;  %v1057_v28 = vmul.f32 %v1055_v27, %v1696_v7  ;;  %1053 = vst [vmem:[#allocation2 - $0x1] sm:$0x4] %v1052_v23  ;;  %v1065_v29 = vld [vmem:[#allocation2 + $0x8] sm:$0xff] }
 0x579   : > { %v813_v32 = vpop.xlane.xlu0 %812  ;;  %1396 = vmatprep.subr.mxu0 %v1065_v29 }
 0x57a   : > { %v824_v22 = vsub.f32 %v1809_v19, %v820_v31  ;;  %v819_v33 = vmul.f32 0.0078125, %v813_v32  ;;  %v829_v20 = vmul.f32 %v825_v30, %v825_v30  ;;  %1058 = vst [vmem:[#allocation2] sm:$0x8] %v1057_v28  ;;  %1397 = vmatpush3.xpose.msra.mxu0 %v1065_v29 }
 0x57c   : > { %v823_v34 = vsub.f32 %v1812_v26, %v819_v33  ;;  %836 = vadd.xlane.f32.xlu1 %v829_v20  ;;  %v828_v35 = vmul.f32 %v824_v22, %v824_v22 }
 0x57d   : > { %v811_v36 = vpop.xlane.xlu0 %810 }
 0x57e   : > { %v818_v37 = vmul.f32 0.0078125, %v811_v36  ;;  %834 = vadd.xlane.f32.xlu0 %v828_v35  ;;  %v827_v38 = vmul.f32 %v823_v34, %v823_v34 }
 0x580   : > { %v822_v39 = vsub.f32 %v1817_v24, %v818_v37  ;;  %832 = vadd.xlane.f32.xlu1 %v827_v38 }
 0x582   : > { %v826_v40 = vmul.f32 %v822_v39, %v822_v39 }
 0x584   : > { %830 = vadd.xlane.f32.xlu0 %v826_v40 }
 0x591   : > { %971 = vperm.xlu1 %1453, %v1302_v41  }
 0x595   : > { %981 = vperm.xlu1 %1453, %v1304_v42  }
 0x599   : > { %999 = vperm.xlu1 %1453, %v993_v43  }
 0x59a   : > { %976 = vperm.xlu0 %1452, %v1303_v44  }
 0x59d   : > { %986 = vperm.xlu1 %1453, %v1305_v45  }
 0x59e   : > { %1004 = vperm.xlu0 %1452, %v994_v46  }
 0x5a1   : > { %1014 = vperm.xlu1 %1453, %v996_v47  }
 0x5a2   : > { %1009 = vperm.xlu0 %1452, %v995_v48  }
 0x5a6   : > { %1033 = vperm.xlu0 %1452, %v1030_v49  }
 0x605   : > { %v837_v51 = vpop.xlane.xlu1 %836 }
 0x606   : > { %v841_v52 = vmul.f32 0.0078125, %v837_v51 }
 0x607   : > { %v835_v53 = vpop.xlane.xlu0 %834 }
 0x608   : > { %v845_v54 = vadd.f32 1e-05, %v841_v52  ;;  %v840_v55 = vmul.f32 0.0078125, %v835_v53  ;;  %v1036_v52 = vlaneseq }
 0x609   : > { %v833_v56 = vpop.xlane.xlu1 %832 }
 0x60a   : > { %1470 = vrsqrt.f32 %v845_v54  ;;  %v844_v57 = vadd.f32 1e-05, %v840_v55  ;;  %v839_v58 = vmul.f32 0.0078125, %v833_v56  ;;  %v1037_v55 = vshrl.u32 %v1036_v52, 7 }
 0x60c   : > { %1472 = vrsqrt.f32 %v844_v57  ;;  %v843_v59 = vadd.f32 1e-05, %v839_v58  ;;  %v1038_v57 = vsub.s32 0, %v1037_v55 }
 0x60d   : > { %v831_v60 = vpop.xlane.xlu0 %830  ;;  %v972_v31 = vpop.permute.xlu1 %971 }
 0x60e   : > { %1474 = vrsqrt.f32 %v843_v59  ;;  %v838_v61 = vmul.f32 0.0078125, %v831_v60 }
 0x610   : > { %v842_v62 = vadd.f32 1e-05, %v838_v61 }
 0x611   : > { %v982_v32 = vpop.permute.xlu1 %981 }
 0x612   : > { %1476 = vrsqrt.f32 %v842_v62 }
 0x615   : > { %v1000_v33 = vpop.permute.xlu1 %999 }
 0x617   : > { %v1471_v63 = vpop.eup %1470 }
 0x618   : > { %v853_v0 = vmul.f32 %v1471_v63, %v825_v30  ;;  %v1064_v30 = vld [vmem:[#allocation2] sm:$0xff] }
 0x619   : > { %v1473_v1 = vpop.eup %1472  ;;  %1398 = vmatprep.subr.mxu0 %v1064_v30  ;;  %v987_v41 = vpop.permute.xlu1 %986 }
 0x61a   : > { %v857_v2 = vmax.f32 %v853_v0, 0.0  ;;  %v852_v3 = vmul.f32 %v1473_v1, %v824_v22  ;;  %1399 = vmatpush3.xpose.msra.mxu0 %v1064_v30  ;;  %v977_v22 = vpop.permute.xlu0 %976 }
 0x61b   : > { %v1475_v4 = vpop.eup %1474 }
 0x61c   : > { %1382 = vmatprep.subr.mxu1 %v857_v2  ;;  %v856_v5 = vmax.f32 %v852_v3, 0.0  ;;  %v851_v6 = vmul.f32 %v1475_v4, %v823_v34 }
 0x61d   : > { %1383 = vmatpush3.msra.mxu1 %v857_v2  ;;  %v1015_v50 = vpop.permute.xlu1 %1014 }
 0x61e   : > { %1384 = vmatprep.subr.mxu1 %v856_v5  ;;  %v855_v8 = vmax.f32 %v851_v6, 0.0  ;;  %v1005_v36 = vpop.permute.xlu0 %1004 }
 0x61f   : > { %v1477_v9 = vpop.eup %1476  ;;  %1385 = vmatpush3.msra.mxu1 %v856_v5 }
 0x620   : > { %1386 = vmatprep.subr.mxu1 %v855_v8  ;;  %v850_v10 = vmul.f32 %v1477_v9, %v822_v39 }
 0x621   : > { %1387 = vmatpush3.msra.mxu1 %v855_v8 }
 0x622   : > { %v854_v11 = vmax.f32 %v850_v10, 0.0  ;;  %v1010_v48 = vpop.permute.xlu0 %1009 }
 0x624   : > { %1388 = vmatprep.subr.mxu1 %v854_v11 }
 0x625   : > { %1389 = vmatpush3.msra.mxu1 %v854_v11 }
 0x626   : > { %1391 = vmatmul.mubr.msk.f32.vlgmr.msra.gmra.mxu1 %vm497_vm2, %v1295_v12 }
 0x627   : > { %1393 = vmatprep.mubr.msk.f32.mxu1 %vm497_vm2, %v1296_v13 }
 0x62a   : > { %1394 = vmatmul.mubr.msk.f32.gmra.mxu1 %vm497_vm2, %v1297_v14 }
 0x6e6   : > { %v1392_v20 = vpop.f32.mrf.mxu1 }
 0x6e7   : > { %v961_v34 = vadd.f32 %v1392_v20, %v1812_v26 }
 0x6e8   : > { %v941_v35 = vpop.f32.mrf.mxu1 }
 0x6e9   : > { %v960_v7 = vadd.f32 %v941_v35, %v1817_v24  ;;  %v990_v38 = vadd.f32 %v977_v22, %v961_v34 }
 0x6ea   : > { %v1395_v37 = vpop.f32.mrf.mxu1 }
 0x6eb   : > { %v989_v39 = vadd.f32 %v972_v31, %v960_v7  ;;  %v963_v40 = vadd.f32 %v1395_v37, %v1806_v18  ;;  %v1018_v45 = vmul.f32 %v1005_v36, %v990_v38 }
 0x6ec   : > { %v951_v42 = vpop.f32.mrf.mxu1 }
 0x6ed   : > { %v1017_v43 = vmul.f32 %v1000_v33, %v989_v39  ;;  %v962_v44 = vadd.f32 %v951_v42, %v1809_v19  ;;  %v992_v46 = vadd.f32 %v987_v41, %v963_v40  ;;  %v1034_v19 = vpop.permute.xlu0 %1033 }
 0x6ee   : > { %v1039_v60 = vrot.slane %v1034_v19, %v1038_v57 }
 0x6ef   : > { %v991_v47 = vadd.f32 %v982_v32, %v962_v44  ;;  %v1021_v26 = vadd.f32 %v1018_v45, %v1017_v43  ;;  %v1020_v24 = vmul.f32 %v1015_v50, %v992_v46 }
 0x6f1   : > { %v1019_v49 = vmul.f32 %v1010_v48, %v991_v47 }
 0x6f3   : > { %v1022_v51 = vadd.f32 %v1021_v26, %v1019_v49 }
 0x6f5   : > { %v1023_v53 = vadd.f32 %v1022_v51, %v1020_v24 }
 0x6f7   : > { %v1024_v54 = vrot.slane %v1023_v53, 4 }
 0x6f9   : > { %v1025_v18 = vadd.f32 %v1024_v54, %v1023_v53 }
 0x6fb   : > { %v1026_v56 = vrot.slane %v1025_v18, 2 }
 0x6fd   : > { %v1027_v58 = vadd.f32 %v1026_v56, %v1025_v18 }
 0x6ff   : > { %v1028_v59 = vrot.slane %v1027_v58, 1 }
 0x701   : > { %v1029_v61 = vadd.f32 %v1028_v59, %v1027_v58 }
 0x703   : > { %v1040_v62 = vadd.f32 %v1039_v60, %v1029_v61 }
 0x705   : > { %1478 = vtanh.f32 %v1040_v62  ;;  %1041 = vst [vmem:[%s301_s26] sm:$0x1] %v1040_v62 }
 0x712   : > { %v1479_v63 = vpop.eup %1478 }
 0x713   : > { %v1043_v0 = vmax.f32 %v1479_v63, 0.0 }
 0x715   : > { %v1067_v1 = vmul.f32 %v1065_v29, %v1043_v0  ;;  %v1066_v2 = vmul.f32 %v1064_v30, %v1043_v0 }
 0x717   : > { %1400 = vmatprep.mubr.f32.mxu0 %v1066_v2 }
 0x718   : > { %1401 = vmatmul.mubr.f32.vlgmr.msra.gmra.mxu0 %v1067_v1 }
 0x719   : > { %1493 = shalt.err (!%p1490_p3)
}
 0x71a   : > { %s1494_s23 = scalar_lea.hbm %s1162_s13, 16  ;;  %s1498_s27 = scalar_lea.hbm %s1955_s7, 32 }
 0x71b   : > { %p1495_p4 = scmp.ne.s32.totalorder %s1162_s13, %s1494_s23  ;;  %p1499_p9 = scmp.lt.s32.totalorder %s1162_s13, %s1955_s7 }
 0x71c   : > { %p1500_p10 = scmp.lt.s32.totalorder %s1498_s27, %s1494_s23 }
 0x71d   : > { %p1496_p7 = pnand %p1495_p4, %p1665_p5 }
 0x71e   : > { %p1501_p11 = por %p1500_p10, %p1499_p9 }
 0x71f   : > { %p1497_p8 = pneg %p1496_p7 }
 0x721   : > { %p1502_p12 = pnand %p1501_p11, %p1497_p8 }
 0x723   : > { %1505 = shalt.err (!%p1502_p12)
}
 0x724   : > { %1403 = dma.vmem_to_hbm [thread:$0]  (%p1665_p5), %s1165_s14, 16, %s1162_s13, %s1147_s18   ;;  %vm1143_vm3 = vcmask 130048  }
 0x725   : > { %s1271_s19 = sshll.u32 %s1879_s25, 4  ;;  %s1312_s22 = sshll.u32 %s1648_s6, 8 }
 0x726   : > { %s308_s20 = scalar_lea.vmem [#allocation6], %s1271_s19  ;;  %s1906_s26 = scalar_lea.hbm %s1956_s8, %s1312_s22 }
 0x727   : > { %s1177_s21 = sshll.u32 %s308_s20, 4  ;;  %s1151_s13 = scalar_lea.sflag [#allocation7], %s1879_s25  ;;  %s1901_s21 = int_to_ptr.vmem [resolvable:$true] %s1177_s21 }
 0x728   : > { %s1506_s14 = scalar_lea.vmem %s1901_s21, 256  ;;  %s1576_s6 = smov [#allocation6]  }
 0x729   : > { %p1507_p13 = scmp.ne.s32.totalorder %s1901_s21, %s1506_s14  ;;  %s1510_s18 = sshll.u32 %s1576_s6, 4  ;;  %s1511_s18 = int_to_ptr.vmem [resolvable:$false] %s1510_s18 }
 0x72a   : > { %s1512_s27 = scalar_lea.vmem %s1511_s18, 512  ;;  %p1513_p2 = scmp.lt.s32.totalorder %s1901_s21, %s1511_s18 }
 0x72b   : > { %p1508_p0 = pnand %p1507_p13, %p1665_p5  ;;  %p1514_p3 = scmp.lt.s32.totalorder %s1512_s27, %s1506_s14 }
 0x72d   : > { %p1509_p1 = pneg %p1508_p0  ;;  %p1515_p4 = por %p1514_p3, %p1513_p2 }
 0x72f   : > { %p1516_p7 = pnand %p1515_p4, %p1509_p1 }
 0x7d8   : > { %v1402_v3 = vpop.f32.mrf.mxu0 }
 0x7d9   : > { %1145 = vst.msk [vmem:[%s308_s20 + $0x8] sm:$0xff] %vm1143_vm3, %v1402_v3 }
 0x7da   : > { %v1134_v4 = vpop.f32.mrf.mxu0 }
 0x7db   : > { %1144 = vst.msk [vmem:[%s308_s20] sm:$0xff] %vm1143_vm3, %v1134_v4 }
 0x7dc   : > { %1519 = shalt.err (!%p1516_p7)
}
 0x7dd   : > { %s1520_s28 = scalar_lea.hbm %s1906_s26, 256  ;;  %s1524_s20 = scalar_lea.hbm %s1956_s8, 512 }
 0x7de   : > { %p1521_p8 = scmp.ne.s32.totalorder %s1906_s26, %s1520_s28  ;;  %p1525_p11 = scmp.lt.s32.totalorder %s1906_s26, %s1956_s8 }
 0x7df   : > { %p1526_p12 = scmp.lt.s32.totalorder %s1524_s20, %s1520_s28 }
 0x7e0   : > { %p1522_p9 = pnand %p1521_p8, %p1665_p5 }
 0x7e1   : > { %p1527_p13 = por %p1526_p12, %p1525_p11 }
 0x7e2   : > { %p1523_p10 = pneg %p1522_p9 }
 0x7e4   : > { %p1528_p0 = pnand %p1527_p13, %p1523_p10 }
 0x7e6   : > { %1531 = shalt.err (!%p1528_p0)
}
 0x7e7   : > { %s1577_s24 = smov 128   ;;  %s1578_s14 = smov 8  }
 0x7e8   : > { %1404 = dma.vmem_to_hbm [thread:$0]  (%p1665_p5), %s1901_s21, 256, %s1906_s26, %s1151_s13, %s1577_s24, %s1577_s24, %s1578_s14  }
 0x7e9 PF: > { %p1414_p1 = scmp.ge.s32.totalorder %s1570_s10, 2  ;;  %s1192_s6 = sand.u32 1, %s1558_s29  }
 0x7ea   : > { %s1193_s18 = scalar_lea.sflag [#allocation5], %s1192_s6 }
 0x7eb   : > { %p1408_p2 = pnand %p1414_p1, %p1669_p6 }
 0x7ed   : > { %p1409_p3 = pneg %p1408_p2 }
 0x7ef   : > { %1549 = dma.done.wait (%p1409_p3), %s1193_s18, 16  }
 0x7f0   : > { %1551 = vsyncadd (%p1409_p3), %s1193_s18, 4294967280  ;;  %s1201_s27 = scalar_lea.sflag [#allocation7], %s1192_s6 }
 0x7f1   : > { %1553 = dma.done.wait (%p1409_p3), %s1201_s27, 256  }
 0x7f2   : > { %1555 = vsyncadd (%p1409_p3), %s1201_s27, 4294967040  ;;  %p24_p5 = scmp.ge.s32.totalorder %s1652_s12, 4   ;;  %s1959_s29 = smov %s1562_s30 }
 0x7f3   : > { %s1960_s30 = smov %s1566_s9  ;;  %s1961_s9 = smov %s1663_s15 }
 0x7f4   : > { %s1962_s10 = smov %s1652_s12  ;;  %26 = sbr.rel (!%p24_p5) target bundleno = 8 (0x8), region = 104 }
 0x7f9   :  { %1206 = vsyncpa [#allocation5], 1 }
 0x7fa   :  { %1208 = vsyncpa [#allocation5 + $0x1], 1 }
 0x7fb   :  { %1209 = vsyncpa [#allocation7], 1 }
 0x7fc   :  { %1211 = vsyncpa [#allocation7 + $0x1], 1 }

</bundles_post_ra>
